<compile_context>
chip_gen: v7x
topology: tpu7x:2x2x1
jax: 0.10.0
libtpu: 0.0.40
codegen_flags: <defaults>
</compile_context>

<pallas_src>
from functools import partial

import jax
import jax.numpy as jnp
from jax.experimental import pallas as pl
from jax.experimental.pallas import tpu as pltpu


_VMEM_LIMIT = 48 * 1024 * 1024  # under v7x's 64 MiB/TC with headroom; fine on v5e/v6e


def _round_up(x, m):
    return ((x + m - 1) // m) * m


def _pick_tile(dim, max_tile, align):
    """Tile size: multiple of `align`, <= max_tile; caller pads dim to a multiple."""
    return min(max_tile, _round_up(dim, align))


# --------------------------- tiled matmul kernel ---------------------------

def _matmul_kernel(x_ref, w_ref, o_ref, acc_ref):
    @pl.when(pl.program_id(2) == 0)
    def _init():
        acc_ref[...] = jnp.zeros_like(acc_ref)

    acc_ref[...] += jnp.dot(x_ref[...], w_ref[...],
                            preferred_element_type=jnp.float32)

    @pl.when(pl.program_id(2) == pl.num_programs(2) - 1)
    def _store():
        o_ref[...] = acc_ref[...].astype(o_ref.dtype)


def pallas_matmul(x, w, *, tm_max=256, tn_max=256, tk_max=512):
    """x: (M, K), w: (K, N) -> (M, N) f32.  bf16 MXU operands, f32 accumulation."""
    M, K = x.shape
    K2, N = w.shape
    assert K == K2
    tm = _pick_tile(M, tm_max, 8)
    tn = _pick_tile(N, tn_max, 128)
    tk = _pick_tile(K, tk_max, 128)
    Mp, Np, Kp = _round_up(M, tm), _round_up(N, tn), _round_up(K, tk)

    xp = jnp.zeros((Mp, Kp), jnp.bfloat16).at[:M, :K].set(x.astype(jnp.bfloat16))
    wp = jnp.zeros((Kp, Np), jnp.bfloat16).at[:K, :N].set(w.astype(jnp.bfloat16))

    out = pl.pallas_call(
        _matmul_kernel,
        out_shape=jax.ShapeDtypeStruct((Mp, Np), jnp.float32),
        grid=(Mp // tm, Np // tn, Kp // tk),
        in_specs=[pl.BlockSpec((tm, tk), lambda i, j, kk: (i, kk)),
                  pl.BlockSpec((tk, tn), lambda i, j, kk: (kk, j))],
        out_specs=pl.BlockSpec((tm, tn), lambda i, j, kk: (i, j)),
        scratch_shapes=[pltpu.VMEM((tm, tn), jnp.float32)],
        compiler_params=pltpu.CompilerParams(
            dimension_semantics=("parallel", "parallel", "arbitrary"),
            vmem_limit_bytes=_VMEM_LIMIT),
    )(xp, wp)
    return out[:M, :N]


# ---------------------------- tiled cdist kernel ----------------------------

def _cdist_kernel(x_ref, y_ref, xx_ref, yy_ref, o_ref):
    # ||x_i - y_j||^2 = ||x_i||^2 + ||y_j||^2 - 2 x_i.y_j
    # Only the cross term hits the MXU (bf16 in, f32 out); the precomputed f32
    # row norms are added via VPU broadcast; sqrt goes to the EUP slot.
    dn = (((1,), (1,)), ((), ()))          # contract feature dim of both operands
    xy = jax.lax.dot_general(x_ref[...], y_ref[...], dn,
                             preferred_element_type=jnp.float32)   # (tm, tn)
    sq = jnp.maximum(xx_ref[...] + yy_ref[...] - 2.0 * xy, 0.0)
    o_ref[...] = jnp.sqrt(sq)


def pallas_cdist(x, y, *, tm_max=256, tn_max=512):
    """x: (M, D), y: (N, D) -> (M, N) pairwise L2 distances (f32)."""
    M, D = x.shape
    N, D2 = y.shape
    assert D == D2
    # NOTE: the feature dim stays fully resident per tile (D is an embedding
    # dim, typically <= a few K -> a couple of MiB per bf16 tile, well in VMEM).
    Dp = _round_up(D, 128)
    tm = _pick_tile(M, tm_max, 8)
    tn = _pick_tile(N, tn_max, 128)
    Mp, Np = _round_up(M, tm), _round_up(N, tn)

    xf = x.astype(jnp.float32)
    yf = y.astype(jnp.float32)
    xx = jnp.sum(xf * xf, axis=1, keepdims=True)        # (M, 1) f32, computed once
    if y is x:
        yy = xx.T                                       # (1, N) reuse for self-cdist
    else:
        yy = jnp.sum(yf * yf, axis=1, keepdims=True).T  # (1, N) f32, computed once

    xb = jnp.zeros((Mp, Dp), jnp.bfloat16).at[:M, :D].set(xf.astype(jnp.bfloat16))
    yb = jnp.zeros((Np, Dp), jnp.bfloat16).at[:N, :D].set(yf.astype(jnp.bfloat16))
    xxp = jnp.zeros((Mp, 1), jnp.float32).at[:M, :].set(xx)
    yyp = jnp.zeros((1, Np), jnp.float32).at[:, :N].set(yy)

    out = pl.pallas_call(
        _cdist_kernel,
        out_shape=jax.ShapeDtypeStruct((Mp, Np), jnp.float32),
        grid=(Mp // tm, Np // tn),
        in_specs=[pl.BlockSpec((tm, Dp), lambda i, j: (i, 0)),
                  pl.BlockSpec((tn, Dp), lambda i, j: (j, 0)),
                  pl.BlockSpec((tm, 1), lambda i, j: (i, 0)),
                  pl.BlockSpec((1, tn), lambda i, j: (0, j))],
        out_specs=pl.BlockSpec((tm, tn), lambda i, j: (i, j)),
        compiler_params=pltpu.CompilerParams(
            dimension_semantics=("parallel", "parallel"),
            vmem_limit_bytes=_VMEM_LIMIT),
    )(xb, yb, xxp, yyp)
    return out[:M, :N]


# ------------------------------- SLOF logic -------------------------------

def _drop_diag_column(r, offset=0):
    """torch.diagonal_scatter mask + r[~mask].view(b, -1): drop col (i+offset) of row i."""
    b, n = r.shape
    rows = jnp.arange(b)[:, None]
    cols = jnp.arange(n - 1)[None, :]
    take = cols + (cols >= (rows + offset)).astype(cols.dtype)
    return jnp.take_along_axis(r, take, axis=1)          # (b, n - 1)


@partial(jax.jit, static_argnums=(0, 1), static_argnames=("k",))
def slof_forward(encode_image, encode_text, images, texts=None, *, k=32):
    vision_features = encode_image(images)               # (b, D)
    # gather_distributed=False, single device -> rank 0, diagonal offset 0
    if texts is None:
        vv = pallas_cdist(vision_features, vision_features)      # computed ONCE
        d = _drop_diag_column(vv)
        full_d = vv                                               # reuse, no 2nd cdist
    else:
        text_features = encode_text(texts)
        vv = pallas_cdist(vision_features, vision_features)
        vt = pallas_cdist(vision_features, text_features)
        tt = pallas_cdist(text_features, text_features)
        # NOTE: matching the PyTorch reference, the diagonal column is also
        # dropped from the vision-vs-text block.
        d = jnp.concatenate([_drop_diag_column(vv), _drop_diag_column(vt)], axis=1)
        # full reference = [V; T]; assemble full_d from the 3 unique blocks
        full_d = jnp.concatenate(
            [jnp.concatenate([vv, vt], axis=1),
             jnp.concatenate([vt.T, tt], axis=1)], axis=0)

    # TODO(synk): torch.sort has no Pallas TPU primitive; only the k+1 smallest
    # entries are needed, so use lax.top_k on the negated distances (plain JAX).
    neg_a, idx = jax.lax.top_k(-d, k + 1)                 # ascending order in d
    a_k = -neg_a[:, k]                                    # == a[:, k]
    idx_k = idx[:, :k]                                    # (b, k)

    neg_full, _ = jax.lax.top_k(-full_d, k + 1)
    kth_full = -neg_full[:, k]                            # per-row (k+1)-th smallest

    d_k = kth_full[idx_k]                                 # (b, k)
    scores = (a_k[:, None] / d_k).mean(axis=1)            # (b,)
    return jnp.nan_to_num(scores, nan=1000.0, posinf=1000.0, neginf=0.0)


# --------------------------------- driver ---------------------------------

if __name__ == "__main__":
    key = jax.random.PRNGKey(0)
    k1, k2, k3, k4 = jax.random.split(key, 4)

    B, C, H, W = 16, 4, 16, 16      # small NCHW images
    T = 64                          # text input dim (synthetic embeddings)
    D = 32                          # shared feature dim
    K = 4                           # SLOF k (must be < B - 1 for these shapes)

    images = jax.random.normal(k1, (B, C, H, W), jnp.float32)
    texts = jax.random.normal(k2, (B, T), jnp.float32)

    # deterministic synthetic "model" parameters
    w_img = jax.random.normal(k3, (C * H * W, D), jnp.float32) * 0.02
    w_txt = jax.random.normal(k4, (T, D), jnp.float32) * 0.02

    encode_image = lambda im: pallas_matmul(im.reshape(im.shape[0], -1), w_img)
    encode_text = lambda tx: pallas_matmul(tx, w_txt)

    scores_vision_only = slof_forward(encode_image, encode_text, images, None, k=K)
    scores_with_text = slof_forward(encode_image, encode_text, images, texts, k=K)
    jax.block_until_ready((scores_vision_only, scores_with_text))

    assert scores_vision_only.shape == (B,)
    assert scores_with_text.shape == (B,)
    assert bool(jnp.all(jnp.isfinite(scores_vision_only)))
    assert bool(jnp.all(jnp.isfinite(scores_with_text)))
    print("KERNEL_OK")
</pallas_src>

<mosaic_0001>
module attributes {stable_mosaic.version = 11 : i64} {
  func.func @_matmul_kernel(%arg0: i32, %arg1: i32, %arg2: i32, %arg3: memref<16x512xbf16, #tpu.memory_space<vmem>>, %arg4: memref<512x128xbf16, #tpu.memory_space<vmem>>, %arg5: memref<16x128xf32, #tpu.memory_space<vmem>>, %arg6: memref<16x128xf32, #tpu.memory_space<vmem>>) attributes {dimension_semantics = [#tpu.dimension_semantics<parallel>, #tpu.dimension_semantics<parallel>, #tpu.dimension_semantics<arbitrary>], iteration_bounds = array<i64: 1, 1, 2>, scalar_prefetch = 0 : i64, scratch_operands = 1 : i64, tpu.core_type = #tpu.core_type<tc>, window_params = [{transform_indices = @transform_0, window_bounds = array<i64: 16, 512>}, {transform_indices = @transform_1, window_bounds = array<i64: 512, 128>}, {transform_indices = @transform_2, window_bounds = array<i64: 16, 128>}]} {
    %c0_i32 = arith.constant 0 : i32
    %0 = arith.cmpi eq, %arg2, %c0_i32 : i32
    %1 = arith.extui %0 : i1 to i32
    %c0_i32_0 = arith.constant 0 : i32
    %2 = arith.cmpi ne, %1, %c0_i32_0 : i32
    scf.if %2 {
      %cst_9 = arith.constant 0.000000e+00 : f32
      %12 = vector.broadcast %cst_9 : f32 to vector<16x128xf32>
      %c0_10 = arith.constant 0 : index
      %c0_11 = arith.constant 0 : index
      %13 = vector.load %arg6[%c0_10, %c0_11] : memref<16x128xf32, #tpu.memory_space<vmem>>, vector<16x128xf32>
      tpu.vector_store %arg6[%c0_10, %c0_11], %12 {strides = array<i32>} : memref<16x128xf32, #tpu.memory_space<vmem>>, vector<16x128xf32>,
    } else {
    }
    %c0 = arith.constant 0 : index
    %c0_1 = arith.constant 0 : index
    %3 = vector.load %arg6[%c0, %c0_1] : memref<16x128xf32, #tpu.memory_space<vmem>>, vector<16x128xf32>
    %c0_2 = arith.constant 0 : index
    %c0_3 = arith.constant 0 : index
    %4 = vector.load %arg3[%c0_2, %c0_3] : memref<16x512xbf16, #tpu.memory_space<vmem>>, vector<16x512xbf16>
    %c0_4 = arith.constant 0 : index
    %c0_5 = arith.constant 0 : index
    %5 = vector.load %arg4[%c0_4, %c0_5] : memref<512x128xbf16, #tpu.memory_space<vmem>>, vector<512x128xbf16>
    %cst = arith.constant dense<0.000000e+00> : vector<16x128xf32>
    %6 = tpu.matmul %4, %5, %cst {dimension_numbers = #tpu.dot_dimension_numbers<[1], [0], [0], [1], [0, 0, 1, 1], [], []>} : vector<16x512xbf16>, vector<512x128xbf16>, vector<16x128xf32> -> vector<16x128xf32>
    %7 = arith.addf %3, %6 : vector<16x128xf32>
    %c0_6 = arith.constant 0 : index
    %c0_7 = arith.constant 0 : index
    %8 = vector.load %arg6[%c0_6, %c0_7] : memref<16x128xf32, #tpu.memory_space<vmem>>, vector<16x128xf32>
    tpu.vector_store %arg6[%c0_6, %c0_7], %7 {strides = array<i32>} : memref<16x128xf32, #tpu.memory_space<vmem>>, vector<16x128xf32>,
    %c1_i32 = arith.constant 1 : i32
    %9 = arith.cmpi eq, %arg2, %c1_i32 : i32
    %10 = arith.extui %9 : i1 to i32
    %c0_i32_8 = arith.constant 0 : i32
    %11 = arith.cmpi ne, %10, %c0_i32_8 : i32
    scf.if %11 {
      %c0_9 = arith.constant 0 : index
      %c0_10 = arith.constant 0 : index
      %12 = vector.load %arg6[%c0_9, %c0_10] : memref<16x128xf32, #tpu.memory_space<vmem>>, vector<16x128xf32>
      %c0_11 = arith.constant 0 : index
      %c0_12 = arith.constant 0 : index
      %13 = vector.load %arg5[%c0_11, %c0_12] : memref<16x128xf32, #tpu.memory_space<vmem>>, vector<16x128xf32>
      tpu.vector_store %arg5[%c0_11, %c0_12], %12 {strides = array<i32>} : memref<16x128xf32, #tpu.memory_space<vmem>>, vector<16x128xf32>,
    } else {
    }
    return
  }
  func.func @transform_0(%arg0: i32, %arg1: i32, %arg2: i32) -> (i32, i32) {
    %c0_i32 = arith.constant 0 : i32
    return %arg0, %arg2 : i32, i32
  }
  func.func @transform_1(%arg0: i32, %arg1: i32, %arg2: i32) -> (i32, i32) {
    %c0_i32 = arith.constant 0 : i32
    return %arg2, %arg1 : i32, i32
  }
  func.func @transform_2(%arg0: i32, %arg1: i32, %arg2: i32) -> (i32, i32) {
    %c0_i32 = arith.constant 0 : i32
    return %arg0, %arg1 : i32, i32
  }
}

module attributes {stable_mosaic.version = 11 : i64} {
  func.func @_cdist_kernel(%arg0: i32, %arg1: i32, %arg2: memref<16x128xbf16, #tpu.memory_space<vmem>>, %arg3: memref<128x128xbf16, #tpu.memory_space<vmem>>, %arg4: memref<16x1xf32, #tpu.memory_space<vmem>>, %arg5: memref<1x128xf32, #tpu.memory_space<vmem>>, %arg6: memref<16x128xf32, #tpu.memory_space<vmem>>) attributes {dimension_semantics = [#tpu.dimension_semantics<parallel>, #tpu.dimension_semantics<parallel>], iteration_bounds = array<i64: 1, 1>, scalar_prefetch = 0 : i64, scratch_operands = 0 : i64, tpu.core_type = #tpu.core_type<tc>, window_params = [{transform_indices = @transform_0, window_bounds = array<i64: 16, 128>}, {transform_indices = @transform_1, window_bounds = array<i64: 128, 128>}, {transform_indices = @transform_2, window_bounds = array<i64: 16, 1>}, {transform_indices = @transform_3, window_bounds = array<i64: 1, 128>}, {transform_indices = @transform_4, window_bounds = array<i64: 16, 128>}]} {
    %c0 = arith.constant 0 : index
    %c0_0 = arith.constant 0 : index
    %0 = vector.load %arg2[%c0, %c0_0] : memref<16x128xbf16, #tpu.memory_space<vmem>>, vector<16x128xbf16>
    %c0_1 = arith.constant 0 : index
    %c0_2 = arith.constant 0 : index
    %1 = vector.load %arg3[%c0_1, %c0_2] : memref<128x128xbf16, #tpu.memory_space<vmem>>, vector<128x128xbf16>
    %cst = arith.constant dense<0.000000e+00> : vector<16x128xf32>
    %2 = tpu.matmul %0, %1, %cst {dimension_numbers = #tpu.dot_dimension_numbers<[1], [1], [0], [0], [0, 0, 1, 0], [], []>} : vector<16x128xbf16>, vector<128x128xbf16>, vector<16x128xf32> -> vector<16x128xf32>
    %c0_3 = arith.constant 0 : index
    %c0_4 = arith.constant 0 : index
    %3 = vector.load %arg4[%c0_3, %c0_4] : memref<16x1xf32, #tpu.memory_space<vmem>>, vector<16x1xf32>
    %c0_5 = arith.constant 0 : index
    %c0_6 = arith.constant 0 : index
    %4 = vector.load %arg5[%c0_5, %c0_6] : memref<1x128xf32, #tpu.memory_space<vmem>>, vector<1x128xf32>
    %5 = vector.broadcast %3 : vector<16x1xf32> to vector<16x128xf32>
    %6 = vector.broadcast %4 : vector<1x128xf32> to vector<16x128xf32>
    %7 = arith.addf %5, %6 : vector<16x128xf32>
    %cst_7 = arith.constant 2.000000e+00 : f32
    %8 = vector.broadcast %cst_7 : f32 to vector<16x128xf32>
    %9 = arith.mulf %8, %2 : vector<16x128xf32>
    %10 = arith.subf %7, %9 : vector<16x128xf32>
    %cst_8 = arith.constant 0.000000e+00 : f32
    %11 = vector.broadcast %cst_8 : f32 to vector<16x128xf32>
    %12 = arith.maximumf %10, %11 : vector<16x128xf32>
    %13 = math.sqrt %12 : vector<16x128xf32>
    %c0_9 = arith.constant 0 : index
    %c0_10 = arith.constant 0 : index
    %14 = vector.load %arg6[%c0_9, %c0_10] : memref<16x128xf32, #tpu.memory_space<vmem>>, vector<16x128xf32>
    tpu.vector_store %arg6[%c0_9, %c0_10], %13 {strides = array<i32>} : memref<16x128xf32, #tpu.memory_space<vmem>>, vector<16x128xf32>,
    return
  }
  func.func @transform_0(%arg0: i32, %arg1: i32) -> (i32, i32) {
    %c0_i32 = arith.constant 0 : i32
    %c0_i32_0 = arith.constant 0 : i32
    return %arg0, %c0_i32 : i32, i32
  }
  func.func @transform_1(%arg0: i32, %arg1: i32) -> (i32, i32) {
    %c0_i32 = arith.constant 0 : i32
    %c0_i32_0 = arith.constant 0 : i32
    return %arg1, %c0_i32 : i32, i32
  }
  func.func @transform_2(%arg0: i32, %arg1: i32) -> (i32, i32) {
    %c0_i32 = arith.constant 0 : i32
    %c0_i32_0 = arith.constant 0 : i32
    return %arg0, %c0_i32 : i32, i32
  }
  func.func @transform_3(%arg0: i32, %arg1: i32) -> (i32, i32) {
    %c0_i32 = arith.constant 0 : i32
    %c0_i32_0 = arith.constant 0 : i32
    return %c0_i32, %arg1 : i32, i32
  }
  func.func @transform_4(%arg0: i32, %arg1: i32) -> (i32, i32) {
    %c0_i32 = arith.constant 0 : i32
    return %arg0, %arg1 : i32, i32
  }
}

</mosaic_0001>

<bundles_post_ra>
// kernel: slof_forward.2
= control target key start
LH: loop header
LB: loop body
LE: loop exit
PB: predicated region body
PF: predicated region fallthrough
CT: control target
= control target key end

     0   :  { %s952_s9 = smov 0   ;;  %s954_s10 = smov 0   ;;  %s1065_s0 = inlined_call_operand.vmem [shape: bf16[16,1024], index: 0, kind: input, shape index: {}]   ;;  %s1066_s1 = inlined_call_operand.vmem [shape: bf16[1024,128], index: 1, kind: input, shape index: {}]   ;;  %s1067_s2 = inlined_call_operand.vmem [shape: f32[16,128], index: 2, kind: output, shape index: {}]  }
   0x1   :  { %s956_s11 = smov 0   ;;  %s958_s12 = smov 0  }
   0x2   :  { %s960_s13 = smov 0  }
   0x3 LB: > { %s24_s14 = sadd.s32 1, %s930_s12  ;;  %p47_p1 = scmp.ne.s32.totalorder %s922_s10, %s918_s9  ;;  %s934_s13 = sphi %s960_s13, %s12_s13   ;;  %s930_s12 = sphi %s958_s12, %s1071_s12   ;;  %s926_s11 = sphi %s956_s11, %s1070_s11   ;;  %s922_s10 = sphi %s954_s10, %s1069_s10   ;;  %s918_s9 = sphi %s952_s9, %s1068_s9  }
   0x4   : > { %p25_p0 = scmp.ge.s32.totalorder %s24_s14, 2  ;;  %p48_p2 = scmp.eq.s32.totalorder %s934_s13, 0 }
   0x5   : > { %s40_s16 = sadd.s32 1, %s922_s10  ;;  %p722_p5 = scmp.ge.s32.totalorder %s934_s13, 2 }
   0x6   : > { %s1073_s14 = smov (%p25_p0, %s24_s14), 0  ;;  %p49_p3 = por %p48_p2, %p47_p1 }
   0x7   : > { %s36_s15 = ssub.s32 %s930_s12, %s1073_s14  ;;  %129 = sbr.rel (%p722_p5) target bundleno = 21 (0x15), region = 16 }
   0x8   : > { %p38_p4 = scmp.eq.s32.totalorder %s36_s15, 0 }
   0xa   : > { %s987_s17 = scalar_select %p38_p4, %s922_s10, %s40_s16  }
   0xe   : > { %132 = sbr.rel (!%p49_p3) target bundleno = 21 (0x15), region = 20  ;;  %s134_s18 = sand.u32 (%p49_p3), 1, %s922_s10  }
   0xf   : > { %s772_s19 = sshll.u32 (%p49_p3), %s930_s12, 4  ;;  %s723_s20 = sshll.u32 (%p49_p3), %s134_s18, 5 }
  0x10   : > { %s142_s23 = scalar_lea.vmem (%p49_p3), %s1065_s0, %s772_s19  ;;  %s136_s24 = scalar_lea.vmem (%p49_p3), [#allocation3], %s723_s20 }
  0x11   : > { %v155_v0 = vld [vmem:[%s142_s23] sm:$0xff] (%p49_p3)  ;;  %v157_v1 = vld [vmem:[%s142_s23 + $0x8] sm:$0xff] (%p49_p3) }
  0x12   : > { %v159_v2 = vld [vmem:[%s142_s23 + $0x20] sm:$0xff] (%p49_p3)  ;;  %156 = vst [vmem:[%s136_s24] sm:$0xff] (%p49_p3), %v155_v0  ;;  %158 = vst [vmem:[%s136_s24 + $0x8] sm:$0xff] (%p49_p3), %v157_v1  ;;  %v161_v3 = vld [vmem:[%s142_s23 + $0x28] sm:$0xff] (%p49_p3) }
  0x13   : > { %160 = vst [vmem:[%s136_s24 + $0x10] sm:$0xff] (%p49_p3), %v159_v2  ;;  %162 = vst [vmem:[%s136_s24 + $0x18] sm:$0xff] (%p49_p3), %v161_v3 }
  0x15 PF: > { %p726_p6 = scmp.ge.s32.totalorder %s934_s13, 1  ;;  %p179_p7 = scmp.lt.s32.totalorder %s934_s13, 3 }
  0x17   : > { %p180_p8 = pnand %p726_p6, %p179_p7 }
  0x18   : > { %s186_s25 = sand.u32 (!%p180_p8), 1, %s918_s9   ;;  %s728_s26 = sshll.u32 (!%p180_p8), %s926_s11, 6 }
  0x19   : > { %183 = sbr.rel (%p180_p8) target bundleno = 304 (0x130), region = 47  ;;  %s727_s27 = sshll.u32 (!%p180_p8), %s186_s25, 5 }
  0x1a   : > { %p221_p9 = scmp.lt.s32.totalorder (!%p180_p8), %s728_s26, 127  ;;  %s1004_s4 = scalar_lea.vmem (!%p180_p8), [#allocation3], %s727_s27 }
  0x1b   : > { %p730_p10 = scmp.ne.s32.totalorder (!%p180_p8), %s926_s11, 0 }
  0x20   : > { %s1075_s26 = smov (!%p221_p9, %s728_s26), 127  ;;  %242 = sbr.rel (%p730_p10) target bundleno = 39 (0x27), region = 55 }
  0x21   : > { %s729_s28 = sshll.u32 %s1075_s26, 2  ;;  %v936_v4 = vmov (!%p730_p10), 0.0  }
  0x22   : > { %s1002_s3 = scalar_lea.vmem %s1066_s1, %s729_s28  ;;  %243 = vst [vmem:[#allocation2] sm:$0xff] (!%p730_p10), %v936_v4  ;;  %244 = vst [vmem:[#allocation2 + $0x8] sm:$0xff] (!%p730_p10), %v936_v4 }
  0x27 PF: > { %v858_v5 = vld [vmem:[%s1002_s3 + $0x40] sm:$0xff]   ;;  %v862_v9 = vld [vmem:[%s1002_s3 + $0x48] sm:$0xff]   ;;  %v866_v13 = vld [vmem:[%s1002_s3 + $0x50] sm:$0xff]   ;;  %p767_p11 = scmp.ne.s32.totalorder %s926_s11, 1 }
  0x28   : > { %v859_v6 = vld [vmem:[%s1002_s3 + $0xc0] sm:$0xff]   ;;  %773 = vmatprep.subr.bf16.mxu0 %v858_v5  ;;  %v863_v10 = vld [vmem:[%s1002_s3 + $0xc8] sm:$0xff]   ;;  %v867_v14 = vld [vmem:[%s1002_s3 + $0xd0] sm:$0xff]  }
  0x29   : > { %v860_v7 = vld [vmem:[%s1002_s3] sm:$0xff]   ;;  %795 = vmatprep.subr.bf16.mxu1 %v859_v6  ;;  %v864_v11 = vld [vmem:[%s1002_s3 + $0x8] sm:$0xff]   ;;  %v868_v15 = vld [vmem:[%s1002_s3 + $0x10] sm:$0xff]  }
  0x2a   : > { %v861_v8 = vld [vmem:[%s1002_s3 + $0x80] sm:$0xff]   ;;  %774 = vmatpush3.bf16.msra.mxu0 %v860_v7  ;;  %v865_v12 = vld [vmem:[%s1002_s3 + $0x88] sm:$0xff]   ;;  %v869_v16 = vld [vmem:[%s1002_s3 + $0x90] sm:$0xff]  }
  0x2b   : > { %796 = vmatpush3.bf16.msra.mxu1 %v861_v8  ;;  %775 = vmatprep.subr.bf16.mxu0 %v862_v9  ;;  %v870_v17 = vld [vmem:[%s1002_s3 + $0x58] sm:$0xff]   ;;  %v874_v21 = vld [vmem:[%s1002_s3 + $0x60] sm:$0xff]   ;;  %v878_v25 = vld [vmem:[%s1002_s3 + $0x68] sm:$0xff]  }
  0x2c   : > { %797 = vmatprep.subr.bf16.mxu1 %v863_v10  ;;  %v871_v18 = vld [vmem:[%s1002_s3 + $0xd8] sm:$0xff]   ;;  %v875_v22 = vld [vmem:[%s1002_s3 + $0xe0] sm:$0xff]   ;;  %v879_v26 = vld [vmem:[%s1002_s3 + $0xe8] sm:$0xff]  }
  0x2d   : > { %v872_v19 = vld [vmem:[%s1002_s3 + $0x18] sm:$0xff]   ;;  %v876_v23 = vld [vmem:[%s1002_s3 + $0x20] sm:$0xff]   ;;  %v880_v27 = vld [vmem:[%s1002_s3 + $0x28] sm:$0xff]  }
  0x2e   : > { %776 = vmatpush3.bf16.msra.mxu0 %v864_v11  ;;  %v873_v20 = vld [vmem:[%s1002_s3 + $0x98] sm:$0xff]   ;;  %v877_v24 = vld [vmem:[%s1002_s3 + $0xa0] sm:$0xff]   ;;  %v881_v28 = vld [vmem:[%s1002_s3 + $0xa8] sm:$0xff]  }
  0x2f   : > { %798 = vmatpush3.bf16.msra.mxu1 %v865_v12  ;;  %777 = vmatprep.subr.bf16.mxu0 %v866_v13  ;;  %v882_v29 = vld [vmem:[%s1002_s3 + $0x70] sm:$0xff]   ;;  %v886_v33 = vld [vmem:[%s1002_s3 + $0x78] sm:$0xff]   ;;  %v245_v50 = vld [vmem:[#allocation2] sm:$0xff] }
  0x30   : > { %799 = vmatprep.subr.bf16.mxu1 %v867_v14  ;;  %v883_v30 = vld [vmem:[%s1002_s3 + $0xf0] sm:$0xff]   ;;  %v887_v34 = vld [vmem:[%s1002_s3 + $0xf8] sm:$0xff]   ;;  %v246_v55 = vld [vmem:[#allocation2 + $0x8] sm:$0xff] }
  0x31   : > { %v884_v31 = vld [vmem:[%s1002_s3 + $0x30] sm:$0xff]   ;;  %v888_v35 = vld [vmem:[%s1002_s3 + $0x38] sm:$0xff]  }
  0x32   : > { %778 = vmatpush3.bf16.msra.mxu0 %v868_v15  ;;  %v885_v32 = vld [vmem:[%s1002_s3 + $0xb0] sm:$0xff]   ;;  %v889_v36 = vld [vmem:[%s1002_s3 + $0xb8] sm:$0xff]  }
  0x33   : > { %800 = vmatpush3.bf16.msra.mxu1 %v869_v16  ;;  %779 = vmatprep.subr.bf16.mxu0 %v870_v17  ;;  %v890_v37 = vld [vmem:[%s1004_s4] ss:$16 sps:$4 sm:$0xff]   ;;  %v892_v38 = vld [vmem:[%s1004_s4 + $0x4] ss:$16 sps:$4 sm:$0xff]   ;;  %v893_v39 = vld [vmem:[%s1004_s4 + $0x8] ss:$16 sps:$4 sm:$0xff]  }
  0x34   : > { %801 = vmatprep.subr.bf16.mxu1 %v871_v18  ;;  %v895_v40 = vld [vmem:[%s1004_s4 + $0xc] ss:$16 sps:$4 sm:$0xff]   ;;  %559 = vmatprep.mubr.bf16.mxu0 %v892_v38 }
  0x35   : > { %600 = vmatprep.mubr.bf16.mxu1 %v895_v40 }
  0x36   : > { %780 = vmatpush3.bf16.msra.mxu0 %v872_v19 }
  0x37   : > { %802 = vmatpush3.bf16.msra.mxu1 %v873_v20  ;;  %781 = vmatprep.subr.bf16.mxu0 %v874_v21 }
  0x38   : > { %803 = vmatprep.subr.bf16.mxu1 %v875_v22 }
  0x3a   : > { %782 = vmatpush3.bf16.msra.mxu0 %v876_v23 }
  0x3b   : > { %804 = vmatpush3.bf16.msra.mxu1 %v877_v24  ;;  %783 = vmatprep.subr.bf16.mxu0 %v878_v25 }
  0x3c   : > { %805 = vmatprep.subr.bf16.mxu1 %v879_v26 }
  0x3e   : > { %784 = vmatpush3.bf16.msra.mxu0 %v880_v27 }
  0x3f   : > { %806 = vmatpush3.bf16.msra.mxu1 %v881_v28  ;;  %785 = vmatprep.subr.bf16.mxu0 %v882_v29 }
  0x40   : > { %807 = vmatprep.subr.bf16.mxu1 %v883_v30 }
  0x42   : > { %786 = vmatpush3.bf16.msra.mxu0 %v884_v31 }
  0x43   : > { %808 = vmatpush3.bf16.msra.mxu1 %v885_v32  ;;  %787 = vmatprep.subr.bf16.mxu0 %v886_v33 }
  0x44   : > { %809 = vmatprep.subr.bf16.mxu1 %v887_v34 }
  0x46   : > { %788 = vmatpush3.bf16.msra.mxu0 %v888_v35 }
  0x47   : > { %810 = vmatpush3.bf16.msra.mxu1 %v889_v36 }
  0x49   : > { %560 = vmatmul.mubr.bf16.vlgmr.msra.gmra.mrb[0].mxu0 %v890_v37 }
  0x4a   : > { %601 = vmatmul.mubr.bf16.vlgmr.msra.gmra.mrb[0].mxu1 %v893_v39 }
 0x11c   : > { %v789_v41 = vpop.f32.mrb[0].mxu0 }
 0x11d   : > { %v811_v42 = vpop.f32.mrb[0].mxu1  ;;  %v790_v43 = vpop.f32.mrb[1].mxu0 }
 0x11e   : > { %v791_v44 = vadd.f32 %v790_v43, %v789_v41  ;;  %v812_v45 = vpop.f32.mrb[1].mxu1  ;;  %v792_v46 = vpop.f32.mrb[2].mxu0 }
 0x11f   : > { %v813_v47 = vadd.f32 %v812_v45, %v811_v42  ;;  %v814_v48 = vpop.f32.mrb[2].mxu1  ;;  %v793_v49 = vpop.f32.mrb[3].mxu0 }
 0x120   : > { %v794_v51 = vadd.f32 %v793_v49, %v792_v46  ;;  %v815_v52 = vpop.f32.mrb[3].mxu1 }
 0x121   : > { %v603_v53 = vadd.f32 %v813_v47, %v791_v44  ;;  %v816_v54 = vadd.f32 %v815_v52, %v814_v48  ;;  %616 = sbr.rel (%p767_p11) target bundleno = 304 (0x130), region = 59 }
 0x123   : > { %v609_v56 = vadd.f32 %v603_v53, %v245_v50  ;;  %v606_v57 = vadd.f32 %v816_v54, %v794_v51 }
 0x125   : > { %611 = vst [vmem:[#allocation2] sm:$0xff] %v609_v56  ;;  %v610_v58 = vadd.f32 %v606_v57, %v246_v55 }
 0x127   : > { %612 = vst [vmem:[#allocation2 + $0x8] sm:$0xff] %v610_v58 }
 0x12c   : > { %v617_v59 = vld [vmem:[#allocation2] sm:$0xff] }
 0x12d   : > { %619 = vst [vmem:[%s1067_s2] sm:$0xff] %v617_v59 }
 0x12e   : > { %v618_v60 = vld [vmem:[#allocation2 + $0x8] sm:$0xff] }
 0x12f   : > { %620 = vst [vmem:[%s1067_s2 + $0x8] sm:$0xff] %v618_v60 }
 0x130 PF: > { %s12_s13 = sadd.s32 1, %s934_s13   ;;  %s1068_s9 = smov %s922_s10 }
 0x131   : > { %p9_p12 = scmp.ge.s32.totalorder %s12_s13, 4   ;;  %s1069_s10 = smov %s987_s17 }
 0x132   : > { %s1070_s11 = smov %s930_s12  ;;  %s1071_s12 = smov %s1073_s14 }
 0x133   :  { %11 = sbr.rel (!%p9_p12) target bundleno = 3 (0x3), region = 97 }

// kernel: slof_forward.3
= control target key start
LH: loop header
LB: loop body
LE: loop exit
PB: predicated region body
PF: predicated region fallthrough
CT: control target
= control target key end

     0   :  { %v234_v0 = vmov 0.0   ;;  %vm235_vm0 = vmmov 0   ;;  %v236_v2 = vmov 0   ;;  %s304_s1 = inlined_call_operand.vmem [shape: bf16[128,128], index: 1, kind: input, shape index: {}]   ;;  %s305_s2 = inlined_call_operand.vmem [shape: f32[16,1], index: 2, kind: input, shape index: {}]   ;;  %s306_s0 = inlined_call_operand.vmem [shape: bf16[16,128], index: 0, kind: input, shape index: {}]   ;;  %s307_s3 = inlined_call_operand.vmem [shape: f32[1,128], index: 3, kind: input, shape index: {}]   ;;  %s308_s4 = inlined_call_operand.vmem [shape: f32[16,128], index: 4, kind: output, shape index: {}]  }
   0x1   :  { %197 = vmatprep.subr.bf16.mxu0 %v234_v0  ;;  %v221_v1 = vld [vmem:[%s304_s1] sm:$0xff]   ;;  %213 = vmatprep.mubr.msk.bf16.mxu0 %vm235_vm0, %v234_v0  ;;  %v222_v3 = vld [vmem:[%s304_s1 + $0x8] sm:$0xff]   ;;  %v223_v6 = vld [vmem:[%s304_s1 + $0x10] sm:$0xff]  }
   0x2   :  { %220 = vset.pattern.permute.xlu0 %v236_v2  ;;  %198 = vmatpush3.bf16.xpose.msra.mxu0 %v221_v1  ;;  %v131_v4 = vld [vmem:[%s305_s2] sm:$0xff]  ;;  %v132_v5 = vld [vmem:[%s305_s2 + $0x8] sm:$0xff]  ;;  %v224_v7 = vld [vmem:[%s304_s1 + $0x18] sm:$0xff]  }
   0x3   :  { %199 = vmatprep.subr.bf16.mxu0 %v234_v0  ;;  %136 = vperm.xlu0 %220, %v131_v4   ;;  %v225_v8 = vld [vmem:[%s304_s1 + $0x20] sm:$0xff]   ;;  %v226_v9 = vld [vmem:[%s304_s1 + $0x28] sm:$0xff]   ;;  %v227_v10 = vld [vmem:[%s304_s1 + $0x30] sm:$0xff]  }
   0x4   :  { %v228_v11 = vld [vmem:[%s304_s1 + $0x38] sm:$0xff]   ;;  %v229_v12 = vld [vmem:[%s306_s0] sm:$0xff]  }
   0x5   :  { %v187_v14 = vld [vmem:[%s307_s3] ss:$0 sm:$0xff] }
   0x7   :  { %141 = vperm.xlu0 %220, %v132_v5  }
   0xa   :  { %200 = vmatpush3.bf16.xpose.msra.mxu0 %v222_v3 }
   0xb   :  { %201 = vmatprep.subr.bf16.mxu0 %v234_v0 }
  0x12   :  { %202 = vmatpush3.bf16.xpose.msra.mxu0 %v223_v6 }
  0x13   :  { %203 = vmatprep.subr.bf16.mxu0 %v234_v0 }
  0x1a   :  { %204 = vmatpush3.bf16.xpose.msra.mxu0 %v224_v7 }
  0x1b   :  { %205 = vmatprep.subr.bf16.mxu0 %v234_v0 }
  0x22   :  { %206 = vmatpush3.bf16.xpose.msra.mxu0 %v225_v8 }
  0x23   :  { %207 = vmatprep.subr.bf16.mxu0 %v234_v0 }
  0x2a   :  { %208 = vmatpush3.bf16.xpose.msra.mxu0 %v226_v9 }
  0x2b   :  { %209 = vmatprep.subr.bf16.mxu0 %v234_v0 }
  0x32   :  { %210 = vmatpush3.bf16.xpose.msra.mxu0 %v227_v10 }
  0x33   :  { %211 = vmatprep.subr.bf16.mxu0 %v234_v0 }
  0x3a   :  { %212 = vmatpush3.bf16.xpose.msra.mxu0 %v228_v11 }
  0x41   :  { %214 = vmatmul.mubr.bf16.vlgmr.msra.gmra.mrb[0].mxu0 %v229_v12 }
  0x82   :  { %v137_v13 = vpop.permute.xlu0 %136 }
  0x83   :  { %v150_v17 = vadd.f32 %v187_v14, %v137_v13 }
  0x86   :  { %v142_v15 = vpop.permute.xlu0 %141 }
  0x87   :  { %v151_v21 = vadd.f32 %v187_v14, %v142_v15 }
 0x114   :  { %v124_v16 = vpop.f32.mrb[0].mxu0 }
 0x115   :  { %v152_v18 = vmul.f32 2.0, %v124_v16  ;;  %v215_v19 = vpop.f32.mrb[1].mxu0 }
 0x116   :  { %v127_v20 = vpop.f32.mrb[2].mxu0 }
 0x117   :  { %v154_v22 = vsub.f32 %v150_v17, %v152_v18  ;;  %v153_v23 = vmul.f32 2.0, %v127_v20  ;;  %v216_v24 = vpop.f32.mrb[3].mxu0 }
 0x119   :  { %v156_v25 = vmax.f32 %v154_v22, 0.0  ;;  %v155_v26 = vsub.f32 %v151_v21, %v153_v23 }
 0x11b   :  { %230 = vrsqrt.f32 %v156_v25  ;;  %v157_v27 = vmax.f32 %v155_v26, 0.0  ;;  %vm160_vm1 = vcmp.eq.f32.partialorder %v156_v25, inf  ;;  %v163_v30 = vand.u32 2147483648, %v156_v25 }
 0x11c   :  { %vm162_vm2 = vcmp.eq.f32.partialorder %v156_v25, 0.0 }
 0x11d   :  { %232 = vrsqrt.f32 %v157_v27  ;;  %vm167_vm3 = vcmp.eq.f32.partialorder %v157_v27, inf  ;;  %v170_v35 = vand.u32 2147483648, %v157_v27  ;;  %vm169_vm4 = vcmp.eq.f32.partialorder %v157_v27, 0.0 }
 0x125   :  { %v231_v28 = vpop.eup %230 }
 0x126   :  { %v159_v29 = vmul.f32 %v231_v28, %v156_v25 }
 0x127   :  { %v233_v31 = vpop.eup %232 }
 0x128   :  { %v161_v32 = vsel %vm160_vm1, %v156_v25, %v159_v29  ;;  %v166_v34 = vmul.f32 %v233_v31, %v157_v27 }
 0x129   :  { %v164_v33 = vsel %vm162_vm2, %v163_v30, %v161_v32 }
 0x12a   :  { %172 = vst [vmem:[%s308_s4] sm:$0xff] %v164_v33  ;;  %v168_v36 = vsel %vm167_vm3, %v157_v27, %v166_v34 }
 0x12b   :  { %v171_v37 = vsel %vm169_vm4, %v170_v35, %v168_v36 }
 0x12c   :  { %173 = vst [vmem:[%s308_s4 + $0x8] sm:$0xff] %v171_v37 }

</bundles_post_ra>
